<compile_context>
chip_gen: v5e
topology: v5e:2x2
jax: 0.10.0
libtpu: 0.0.40
codegen_flags: <defaults>
</compile_context>

<pallas_src>
import functools

import jax
import jax.numpy as jnp
from jax.experimental import pallas as pl
from jax.experimental.pallas import tpu as pltpu


_SQRT_HALF = 0.7071067811865476
_SQRT_2_OVER_PI = 0.7978845608028654


def _gelu_exact(x):
    # PyTorch nn.GELU() default (approximate='none'): exact erf formulation.
    return 0.5 * x * (1.0 + jax.lax.erf(x * _SQRT_HALF))


def _gelu_tanh(x):
    # nn.GELU(approximate='tanh'): tanh runs on the EUP (its own bundle slot),
    # cheaper than the erf VPU polynomial, but not bit-identical to the default.
    return 0.5 * x * (1.0 + jnp.tanh(_SQRT_2_OVER_PI * (x + 0.044715 * x * x * x)))


def _make_ffn_kernel(approximate_gelu):
    def kernel(x_ref, w1_ref, b1_ref, w2_ref, b2_ref, o_ref, acc_ref):
        # x_ref:  (tm, dim_p)   row tile (same block for every hidden step)
        # w1_ref: (dim_p, th)   hidden-column slice of W1
        # b1_ref: (1, th)       matching slice of b1
        # w2_ref: (th, dim_p)   matching hidden-row slice of W2
        # b2_ref: (1, dim_p)    full b2 (added once, on the last hidden step)
        # acc_ref:(tm, dim_p)   f32 accumulator, resident across hidden steps
        j = pl.program_id(1)

        @pl.when(j == 0)
        def _():
            acc_ref[...] = jnp.zeros_like(acc_ref)

        h = jnp.dot(x_ref[...], w1_ref[...], preferred_element_type=jnp.float32)
        h = h + b1_ref[...].astype(jnp.float32)
        h = _gelu_tanh(h) if approximate_gelu else _gelu_exact(h)

        acc_ref[...] += jnp.dot(
            h.astype(w2_ref.dtype), w2_ref[...], preferred_element_type=jnp.float32
        )

        @pl.when(j == pl.num_programs(1) - 1)
        def _():
            o_ref[...] = (
                acc_ref[...] + b2_ref[...].astype(jnp.float32)
            ).astype(o_ref.dtype)

    return kernel


def _round_up(x, m):
    return (x + m - 1) // m * m


@functools.lru_cache(maxsize=None)
def _tpu_params():
    """(vmem_capacity_bytes, mxu_width, has_two_tensorcores) with safe fallbacks."""
    vmem_cap = 64 << 20  # most conservative (v7x per-TensorCore)
    try:
        vmem_cap = int(pltpu.get_tpu_info().vmem_capacity_bytes)
    except Exception:
        pass
    kind = ""
    try:
        kind = jax.devices()[0].device_kind.lower()
    except Exception:
        pass
    small_mxu = any(t in kind for t in ("v2", "v3", "v4", "v5"))
    mxu = 128 if small_mxu else 256          # v6e/v7x: 2x256x256 MXUs
    two_tc = ("v7" in kind) or ("7x" in kind)
    return vmem_cap, mxu, two_tc


def _derive_tiles(m, dim, hidden, op_itemsize):
    """Static (Python) tile derivation: (tm, th, weight_buffers, vmem_limit)."""
    vmem_cap, mxu, two_tc = _tpu_params()
    budget = int(0.70 * vmem_cap)            # tile budget; leaves compiler headroom

    dim_p = _round_up(dim, 128)
    hidden_128 = _round_up(hidden, 128)

    # dtype sublane packing: f32 -> 8, bf16 -> 16, int8/fp8 -> 32 rows / vreg.
    sub = {4: 8, 2: 16, 1: 32}.get(op_itemsize, 8)

    # Hidden tile: lane-dense, floored at the MXU width (256 on v6e/v7x), and
    # preferring a divisor of the 128-aligned hidden dim (no extra padding).
    th_floor = min(256 if mxu >= 256 else 128, hidden_128)
    th = max(min(512, hidden_128), th_floor)
    if hidden_128 % th:
        for cand in range(th, th_floor - 1, -128):
            if hidden_128 % cand == 0:
                th = cand
                break

    def vmem_bytes(tm_, th_, wbuf_):
        words = (2 * tm_ * dim_p            # x tiles (double buffered)
                 + wbuf_ * dim_p * th_      # W1 tiles
                 + wbuf_ * th_ * dim_p      # W2 tiles
                 + 2 * th_ + 2 * dim_p      # b1, b2
                 + 2 * tm_ * dim_p)         # output tiles (double buffered)
        return words * op_itemsize + tm_ * dim_p * 4   # + f32 accumulator

    # Row tile: the weight stream's arithmetic intensity is ~tm flop/byte, so
    # target the per-generation roofline (~650 flop/byte v6e/v7x, ~240 v5e).
    tm_target = 1024 if mxu >= 256 else 512
    m_sub = _round_up(m, sub)

    if m_sub <= tm_target and vmem_bytes(m_sub, th, 2) <= budget:
        tm = m_sub                           # single row tile: weights stream once
    else:
        tm = min(tm_target, _round_up(m_sub, 256))   # cap dead-row padding
        tm = _round_up(tm, 256) if tm >= 256 else _round_up(tm, sub)

    # v7x: two TensorCores share HBM; keep >=2 row tiles when there is enough work.
    if two_tc and m_sub > 512 and _round_up(m, tm) // tm < 2:
        half = -(-m_sub // 2)
        tm = _round_up(half, 256) if half >= 256 else _round_up(half, sub)

    # Shrink into the VMEM budget: th first (down to the MXU floor), then tm.
    while vmem_bytes(tm, th, 2) > budget:
        if th > th_floor:
            th = max(th_floor, _round_up(th // 2, 128))
        elif tm > 256:
            tm = max(256, _round_up(tm // 2, 256))
        elif tm > sub:
            tm = max(sub, (tm // 2) // sub * sub)
        elif th > 128:
            th = max(128, th // 2)
        else:
            break

    # Triple-buffer the weight stream only when it helps (multiple row tiles)
    # and it fits; hides the weight-pipeline restart at row-tile boundaries.
    n_row_tiles = _round_up(m, tm) // tm
    wbuf = 3 if (n_row_tiles >= 2 and vmem_bytes(tm, th, 3) <= budget) else 2

    vmem_limit = int(min(max(vmem_bytes(tm, th, wbuf) + (8 << 20), 32 << 20),
                         int(0.92 * vmem_cap)))
    return tm, th, wbuf, vmem_limit


@functools.partial(
    jax.jit,
    static_argnames=("tm", "th", "wbuf", "vmem_limit", "approximate_gelu"),
)
def _feed_forward_impl(x2, w1, b1, w2, b2, *, tm, th, wbuf, vmem_limit,
                       approximate_gelu):
    m, dim = x2.shape
    hidden = w1.shape[-1]
    op_itemsize = jnp.dtype(w1.dtype).itemsize

    dim_p = _round_up(dim, 128)
    hidden_p = _round_up(_round_up(hidden, 128), th)
    m_p = _round_up(m, tm)

    # Zero padding is mathematically inert here: padded hidden columns give
    # GELU(0)=0 against zero W2 rows; padded rows / output columns are sliced
    # off.  For 128-aligned model shapes all pads are zero-width and elided by
    # XLA; for ragged dims, prefer padding the weights once offline.
    xp = jnp.pad(x2, ((0, m_p - m), (0, dim_p - dim)))
    w1p = jnp.pad(w1, ((0, dim_p - dim), (0, hidden_p - hidden)))
    b1p = jnp.pad(b1.reshape(1, -1), ((0, 0), (0, hidden_p - hidden)))
    w2p = jnp.pad(w2, ((0, hidden_p - hidden), (0, dim_p - dim)))
    b2p = jnp.pad(b2.reshape(1, -1), ((0, 0), (0, dim_p - dim)))

    grid = (m_p // tm, hidden_p // th)
    n_row_tiles = grid[0]

    # Weights are re-streamed once per row tile -> count that in bytes_accessed.
    cost = pl.CostEstimate(
        flops=4 * m_p * dim_p * hidden_p,          # two matmuls
        transcendentals=m_p * hidden_p,            # GELU
        bytes_accessed=(
            n_row_tiles * (w1p.size + b1p.size + w2p.size + b2p.size) * op_itemsize
            + xp.size * jnp.dtype(x2.dtype).itemsize
            + m_p * dim_p * jnp.dtype(x2.dtype).itemsize
        ),
    )

    def weight_spec(shape, index_map):
        if wbuf > 2 and hasattr(pl, "Buffered"):
            try:
                return pl.BlockSpec(shape, index_map,
                                    pipeline_mode=pl.Buffered(wbuf))
            except TypeError:  # older BlockSpec without pipeline_mode
                pass
        return pl.BlockSpec(shape, index_map)

    out = pl.pallas_call(
        _make_ffn_kernel(approximate_gelu),
        out_shape=jax.ShapeDtypeStruct((m_p, dim_p), x2.dtype),
        grid_spec=pltpu.PrefetchScalarGridSpec(
            num_scalar_prefetch=0,
            grid=grid,
            in_specs=[
                pl.BlockSpec((tm, dim_p), lambda i, j: (i, 0)),    # x rows
                weight_spec((dim_p, th), lambda i, j: (0, j)),     # W1 slice
                pl.BlockSpec((1, th), lambda i, j: (0, j)),        # b1 slice
                weight_spec((th, dim_p), lambda i, j: (j, 0)),     # W2 slice
                pl.BlockSpec((1, dim_p), lambda i, j: (0, 0)),     # b2 (invariant)
            ],
            out_specs=pl.BlockSpec((tm, dim_p), lambda i, j: (i, 0)),
            scratch_shapes=[pltpu.VMEM((tm, dim_p), jnp.float32)],
        ),
        compiler_params=pltpu.CompilerParams(
            dimension_semantics=("parallel", "arbitrary"),
            vmem_limit_bytes=int(vmem_limit),
        ),
        cost_estimate=cost,
    )(xp, w1p, b1p, w2p, b2p)

    return out[:m, :dim]


def feed_forward(x, w1, b1, w2, b2, *, approximate_gelu=False):
    """Fused MLP: GELU(x @ W1 + b1) @ W2 + b2 over the last dim of x.

    x: (..., dim); w1: (dim, hidden); b1: (hidden,) or (1, hidden);
    w2: (hidden, dim); b2: (dim,) or (1, dim).  Returns x.shape, x.dtype.
    Dropout with p=0.0 is the identity and is elided.
    """
    orig_shape = x.shape
    dim = orig_shape[-1]
    hidden = w1.shape[-1]
    x2 = x.reshape(-1, dim)
    m = x2.shape[0]

    tm, th, wbuf, vmem_limit = _derive_tiles(
        m, dim, hidden, jnp.dtype(w1.dtype).itemsize
    )
    out2 = _feed_forward_impl(
        x2, w1, b1, w2, b2,
        tm=tm, th=th, wbuf=wbuf, vmem_limit=vmem_limit,
        approximate_gelu=approximate_gelu,
    )
    return out2.reshape(orig_shape)


def _reference(x, w1, b1, w2, b2):
    h = x @ w1 + b1.reshape(1, -1)
    h = 0.5 * h * (1.0 + jax.lax.erf(h / jnp.sqrt(2.0)))
    return h @ w2 + b2.reshape(1, -1)


if __name__ == "__main__":
    # Small shapes consistent with the module: (batch, seq, dim) tokens and a
    # hidden expansion of hidden_dim.
    batch, seq, dim, hidden_dim = 2, 8, 16, 32

    key = jax.random.PRNGKey(0)
    kx, k1, k2, k3, k4 = jax.random.split(key, 5)

    x = jax.random.normal(kx, (batch, seq, dim), dtype=jnp.float32)

    # PyTorch Linear stores weight as (out, in); we keep (in, out) so the
    # kernel computes x @ W directly — identical math.
    bound1 = 1.0 / jnp.sqrt(dim)
    bound2 = 1.0 / jnp.sqrt(hidden_dim)
    w1 = jax.random.uniform(k1, (dim, hidden_dim), jnp.float32, -bound1, bound1)
    b1 = jax.random.uniform(k2, (1, hidden_dim), jnp.float32, -bound1, bound1)
    w2 = jax.random.uniform(k3, (hidden_dim, dim), jnp.float32, -bound2, bound2)
    b2 = jax.random.uniform(k4, (1, dim), jnp.float32, -bound2, bound2)

    # --- float32 run: must match PyTorch nn.GELU() (exact erf) semantics ---
    out = feed_forward(x, w1, b1, w2, b2)
    out = jax.block_until_ready(out)

    ref = _reference(x.reshape(-1, dim), w1, b1, w2, b2).reshape(x.shape)
    assert out.shape == x.shape
    assert jnp.allclose(out, ref, atol=1e-5, rtol=1e-5), "f32 mismatch vs reference"

    # --- bf16 operand path (f32 accumulation): fast path on v6e/v7x ---
    out_bf16 = feed_forward(
        x.astype(jnp.bfloat16),
        w1.astype(jnp.bfloat16), b1.astype(jnp.bfloat16),
        w2.astype(jnp.bfloat16), b2.astype(jnp.bfloat16),
    )
    out_bf16 = jax.block_until_ready(out_bf16)
    assert jnp.allclose(out_bf16.astype(jnp.float32), ref, atol=5e-2, rtol=5e-2), \
        "bf16 mismatch vs reference"

    print("KERNEL_OK")
</pallas_src>

<mosaic_0001>
module attributes {stable_mosaic.version = 11 : i64} {
  func.func @kernel(%arg0: i32, %arg1: i32, %arg2: memref<16x128xf32, #tpu.memory_space<vmem>>, %arg3: memref<128x128xf32, #tpu.memory_space<vmem>>, %arg4: memref<1x128xf32, #tpu.memory_space<vmem>>, %arg5: memref<128x128xf32, #tpu.memory_space<vmem>>, %arg6: memref<1x128xf32, #tpu.memory_space<vmem>>, %arg7: memref<16x128xf32, #tpu.memory_space<vmem>>, %arg8: memref<16x128xf32, #tpu.memory_space<vmem>>) attributes {dimension_semantics = [#tpu.dimension_semantics<parallel>, #tpu.dimension_semantics<arbitrary>], iteration_bounds = array<i64: 1, 1>, scalar_prefetch = 0 : i64, scratch_operands = 1 : i64, tpu.core_type = #tpu.core_type<tc>, window_params = [{transform_indices = @transform_0, window_bounds = array<i64: 16, 128>}, {transform_indices = @transform_1, window_bounds = array<i64: 128, 128>}, {transform_indices = @transform_2, window_bounds = array<i64: 1, 128>}, {transform_indices = @transform_3, window_bounds = array<i64: 128, 128>}, {pipeline_mode = #tpu.pipeline_mode<synchronous>, transform_indices = @transform_4, window_bounds = array<i64: 1, 128>}, {transform_indices = @transform_5, window_bounds = array<i64: 16, 128>}]} {
    %c0_i32 = arith.constant 0 : i32
    %0 = arith.cmpi eq, %arg1, %c0_i32 : i32
    %1 = arith.extui %0 : i1 to i32
    %c0_i32_0 = arith.constant 0 : i32
    %2 = arith.cmpi ne, %1, %c0_i32_0 : i32
    scf.if %2 {
      %cst_18 = arith.constant 0.000000e+00 : f32
      %25 = vector.broadcast %cst_18 : f32 to vector<16x128xf32>
      %c0_19 = arith.constant 0 : index
      %c0_20 = arith.constant 0 : index
      %26 = vector.load %arg8[%c0_19, %c0_20] : memref<16x128xf32, #tpu.memory_space<vmem>>, vector<16x128xf32>
      tpu.vector_store %arg8[%c0_19, %c0_20], %25 {strides = array<i32>} : memref<16x128xf32, #tpu.memory_space<vmem>>, vector<16x128xf32>,
    } else {
    }
    %c0 = arith.constant 0 : index
    %c0_1 = arith.constant 0 : index
    %3 = vector.load %arg2[%c0, %c0_1] : memref<16x128xf32, #tpu.memory_space<vmem>>, vector<16x128xf32>
    %c0_2 = arith.constant 0 : index
    %c0_3 = arith.constant 0 : index
    %4 = vector.load %arg3[%c0_2, %c0_3] : memref<128x128xf32, #tpu.memory_space<vmem>>, vector<128x128xf32>
    %cst = arith.constant dense<0.000000e+00> : vector<16x128xf32>
    %5 = tpu.matmul %3, %4, %cst {dimension_numbers = #tpu.dot_dimension_numbers<[1], [0], [0], [1], [0, 0, 1, 1], [], []>} : vector<16x128xf32>, vector<128x128xf32>, vector<16x128xf32> -> vector<16x128xf32>
    %c0_4 = arith.constant 0 : index
    %c0_5 = arith.constant 0 : index
    %6 = vector.load %arg4[%c0_4, %c0_5] : memref<1x128xf32, #tpu.memory_space<vmem>>, vector<1x128xf32>
    %7 = vector.broadcast %6 : vector<1x128xf32> to vector<16x128xf32>
    %8 = arith.addf %5, %7 : vector<16x128xf32>
    %cst_6 = arith.constant 5.000000e-01 : f32
    %9 = vector.broadcast %cst_6 : f32 to vector<16x128xf32>
    %10 = arith.mulf %9, %8 : vector<16x128xf32>
    %cst_7 = arith.constant 0.707106769 : f32
    %11 = vector.broadcast %cst_7 : f32 to vector<16x128xf32>
    %12 = arith.mulf %8, %11 : vector<16x128xf32>
    %13 = math.erf %12 : vector<16x128xf32>
    %cst_8 = arith.constant 1.000000e+00 : f32
    %14 = vector.broadcast %cst_8 : f32 to vector<16x128xf32>
    %15 = arith.addf %14, %13 : vector<16x128xf32>
    %16 = arith.mulf %10, %15 : vector<16x128xf32>
    %c0_9 = arith.constant 0 : index
    %c0_10 = arith.constant 0 : index
    %17 = vector.load %arg8[%c0_9, %c0_10] : memref<16x128xf32, #tpu.memory_space<vmem>>, vector<16x128xf32>
    %c0_11 = arith.constant 0 : index
    %c0_12 = arith.constant 0 : index
    %18 = vector.load %arg5[%c0_11, %c0_12] : memref<128x128xf32, #tpu.memory_space<vmem>>, vector<128x128xf32>
    %cst_13 = arith.constant dense<0.000000e+00> : vector<16x128xf32>
    %19 = tpu.matmul %16, %18, %cst_13 {dimension_numbers = #tpu.dot_dimension_numbers<[1], [0], [0], [1], [0, 0, 1, 1], [], []>} : vector<16x128xf32>, vector<128x128xf32>, vector<16x128xf32> -> vector<16x128xf32>
    %20 = arith.addf %17, %19 : vector<16x128xf32>
    %c0_14 = arith.constant 0 : index
    %c0_15 = arith.constant 0 : index
    %21 = vector.load %arg8[%c0_14, %c0_15] : memref<16x128xf32, #tpu.memory_space<vmem>>, vector<16x128xf32>
    tpu.vector_store %arg8[%c0_14, %c0_15], %20 {strides = array<i32>} : memref<16x128xf32, #tpu.memory_space<vmem>>, vector<16x128xf32>,
    %c0_i32_16 = arith.constant 0 : i32
    %22 = arith.cmpi eq, %arg1, %c0_i32_16 : i32
    %23 = arith.extui %22 : i1 to i32
    %c0_i32_17 = arith.constant 0 : i32
    %24 = arith.cmpi ne, %23, %c0_i32_17 : i32
    scf.if %24 {
      %c0_18 = arith.constant 0 : index
      %c0_19 = arith.constant 0 : index
      %25 = vector.load %arg8[%c0_18, %c0_19] : memref<16x128xf32, #tpu.memory_space<vmem>>, vector<16x128xf32>
      %c0_20 = arith.constant 0 : index
      %c0_21 = arith.constant 0 : index
      %26 = vector.load %arg6[%c0_20, %c0_21] : memref<1x128xf32, #tpu.memory_space<vmem>>, vector<1x128xf32>
      %27 = vector.broadcast %26 : vector<1x128xf32> to vector<16x128xf32>
      %28 = arith.addf %25, %27 : vector<16x128xf32>
      %c0_22 = arith.constant 0 : index
      %c0_23 = arith.constant 0 : index
      %29 = vector.load %arg7[%c0_22, %c0_23] : memref<16x128xf32, #tpu.memory_space<vmem>>, vector<16x128xf32>
      tpu.vector_store %arg7[%c0_22, %c0_23], %28 {strides = array<i32>} : memref<16x128xf32, #tpu.memory_space<vmem>>, vector<16x128xf32>,
    } else {
    }
    return
  }
  func.func @transform_0(%arg0: i32, %arg1: i32) -> (i32, i32) {
    %c0_i32 = arith.constant 0 : i32
    %c0_i32_0 = arith.constant 0 : i32
    return %arg0, %c0_i32 : i32, i32
  }
  func.func @transform_1(%arg0: i32, %arg1: i32) -> (i32, i32) {
    %c0_i32 = arith.constant 0 : i32
    %c0_i32_0 = arith.constant 0 : i32
    return %c0_i32, %arg1 : i32, i32
  }
  func.func @transform_2(%arg0: i32, %arg1: i32) -> (i32, i32) {
    %c0_i32 = arith.constant 0 : i32
    %c0_i32_0 = arith.constant 0 : i32
    return %c0_i32, %arg1 : i32, i32
  }
  func.func @transform_3(%arg0: i32, %arg1: i32) -> (i32, i32) {
    %c0_i32 = arith.constant 0 : i32
    %c0_i32_0 = arith.constant 0 : i32
    return %arg1, %c0_i32 : i32, i32
  }
  func.func @transform_4(%arg0: i32, %arg1: i32) -> (i32, i32) {
    %c0_i32 = arith.constant 0 : i32
    %c0_i32_0 = arith.constant 0 : i32
    %c0_i32_1 = arith.constant 0 : i32
    return %c0_i32, %c0_i32_0 : i32, i32
  }
  func.func @transform_5(%arg0: i32, %arg1: i32) -> (i32, i32) {
    %c0_i32 = arith.constant 0 : i32
    %c0_i32_0 = arith.constant 0 : i32
    return %arg0, %c0_i32 : i32, i32
  }
}

</mosaic_0001>

<bundles_post_ra>
// kernel: _feed_forward_impl.1
= control target key start
LH: loop header
LB: loop body
LE: loop exit
PB: predicated region body
PF: predicated region fallthrough
CT: control target
= control target key end

     0   :  { %s479_s0 = inlined_call_operand.vmem [shape: f32[16,128], index: 0, kind: input, shape index: {}]   ;;  %s480_s1 = inlined_call_operand.vmem [shape: f32[128,128], index: 1, kind: input, shape index: {}]   ;;  %s481_s2 = inlined_call_operand.vmem [shape: f32[1,128], index: 2, kind: input, shape index: {}]   ;;  %s482_s3 = inlined_call_operand.vmem [shape: f32[128,128], index: 3, kind: input, shape index: {}]   ;;  %s483_s4 = inlined_call_operand.vmem [shape: f32[1,128], index: 4, kind: input, shape index: {}]   ;;  %s484_s5 = inlined_call_operand.hbm [shape: f32[16,128], index: 5, kind: output, shape index: {}]  }
   0x1   :  { %v44_v0 = vld [vmem:[%s480_s1 + $0x78] sm:$0xff]  ;;  %v43_v1 = vld [vmem:[%s480_s1 + $0x70] sm:$0xff]  ;;  %v42_v2 = vld [vmem:[%s480_s1 + $0x68] sm:$0xff] }
   0x2   :  { %49 = vmatpush.msra.mxu0 %v44_v0  ;;  %238 = vmatpush.msra.mxu2 %v44_v0  ;;  %v41_v3 = vld [vmem:[%s480_s1 + $0x60] sm:$0xff]  ;;  %v40_v4 = vld [vmem:[%s480_s1 + $0x58] sm:$0xff] }
   0x4   :  { %50 = vmatpush.msra.mxu0 %v43_v1  ;;  %239 = vmatpush.msra.mxu2 %v43_v1 }
   0x6   :  { %51 = vmatpush.msra.mxu0 %v42_v2  ;;  %240 = vmatpush.msra.mxu2 %v42_v2 }
   0x8   :  { %52 = vmatpush.msra.mxu0 %v41_v3  ;;  %241 = vmatpush.msra.mxu2 %v41_v3 }
   0x9   :  { %10 = vsyncpa [#allocation4], 0  ;;  %v39_v5 = vld [vmem:[%s480_s1 + $0x50] sm:$0xff]  ;;  %v38_v6 = vld [vmem:[%s480_s1 + $0x48] sm:$0xff]  ;;  %s305_s9 = smov [#allocation3]   ;;  %s224_s13 = sshll.u32 %s484_s5, 4  ;;  %s225_s13 = int_to_ptr.hbm [resolvable:$true] %s224_s13 }
   0xa   :  { %53 = vmatpush.msra.mxu0 %v40_v4  ;;  %242 = vmatpush.msra.mxu2 %v40_v4  ;;  %v37_v7 = vld [vmem:[%s480_s1 + $0x40] sm:$0xff]  ;;  %v36_v8 = vld [vmem:[%s480_s1 + $0x38] sm:$0xff]  ;;  %v35_v9 = vld [vmem:[%s480_s1 + $0x30] sm:$0xff]  ;;  %s222_s10 = sshll.u32 %s305_s9, 4  ;;  %s306_s14 = smov 128   ;;  %s223_s10 = int_to_ptr.vmem [resolvable:$true] %s222_s10 }
   0xb   :  { %v34_v10 = vld [vmem:[%s480_s1 + $0x28] sm:$0xff]  ;;  %v33_v11 = vld [vmem:[%s480_s1 + $0x20] sm:$0xff]  ;;  %v32_v12 = vld [vmem:[%s480_s1 + $0x18] sm:$0xff]  ;;  %s307_s15 = smov 8  }
   0xc   :  { %54 = vmatpush.msra.mxu0 %v39_v5  ;;  %243 = vmatpush.msra.mxu2 %v39_v5  ;;  %v31_v13 = vld [vmem:[%s480_s1 + $0x10] sm:$0xff]  ;;  %v30_v14 = vld [vmem:[%s480_s1 + $0x8] sm:$0xff]  ;;  %v29_v15 = vld [vmem:[%s480_s1] sm:$0xff] }
   0xd   :  { %v27_v16 = vld [vmem:[%s479_s0] sm:$0xff]  ;;  %v28_v17 = vld [vmem:[%s479_s0 + $0x8] sm:$0xff]  ;;  %v177_v18 = vld [vmem:[%s482_s3 + $0x78] sm:$0xff] }
   0xe   :  { %55 = vmatpush.msra.mxu0 %v38_v6  ;;  %244 = vmatpush.msra.mxu2 %v38_v6  ;;  %v176_v19 = vld [vmem:[%s482_s3 + $0x70] sm:$0xff]  ;;  %v175_v20 = vld [vmem:[%s482_s3 + $0x68] sm:$0xff]  ;;  %v174_v21 = vld [vmem:[%s482_s3 + $0x60] sm:$0xff] }
   0xf   :  { %178 = vmatpush.msra.mxu1 %v177_v18  ;;  %254 = vmatpush.msra.mxu3 %v177_v18  ;;  %v273_v22 = vld [vmem:[%s481_s2] ss:$0 sm:$0xff]  ;;  %v173_v23 = vld [vmem:[%s482_s3 + $0x58] sm:$0xff]  ;;  %v172_v25 = vld [vmem:[%s482_s3 + $0x50] sm:$0xff] }
  0x10   :  { %56 = vmatpush.msra.mxu0 %v37_v7  ;;  %245 = vmatpush.msra.mxu2 %v37_v7  ;;  %v171_v27 = vld [vmem:[%s482_s3 + $0x48] sm:$0xff]  ;;  %v170_v29 = vld [vmem:[%s482_s3 + $0x40] sm:$0xff]  ;;  %v169_v30 = vld [vmem:[%s482_s3 + $0x38] sm:$0xff] }
  0x11   :  { %179 = vmatpush.msra.mxu1 %v176_v19  ;;  %255 = vmatpush.msra.mxu3 %v176_v19  ;;  %v168_v33 = vld [vmem:[%s482_s3 + $0x30] sm:$0xff]  ;;  %v167_v36 = vld [vmem:[%s482_s3 + $0x28] sm:$0xff]  ;;  %v166_v39 = vld [vmem:[%s482_s3 + $0x20] sm:$0xff] }
  0x12   :  { %57 = vmatpush.msra.mxu0 %v36_v8  ;;  %246 = vmatpush.msra.mxu2 %v36_v8  ;;  %v165_v43 = vld [vmem:[%s482_s3 + $0x18] sm:$0xff]  ;;  %v164_v47 = vld [vmem:[%s482_s3 + $0x10] sm:$0xff]  ;;  %v163_v52 = vld [vmem:[%s482_s3 + $0x8] sm:$0xff] }
  0x13   :  { %180 = vmatpush.msra.mxu1 %v175_v20  ;;  %256 = vmatpush.msra.mxu3 %v175_v20  ;;  %v162_v56 = vld [vmem:[%s482_s3] sm:$0xff] }
  0x14   :  { %58 = vmatpush.msra.mxu0 %v35_v9  ;;  %247 = vmatpush.msra.mxu2 %v35_v9 }
  0x15   :  { %181 = vmatpush.msra.mxu1 %v174_v21  ;;  %257 = vmatpush.msra.mxu3 %v174_v21 }
  0x16   :  { %59 = vmatpush.msra.mxu0 %v34_v10  ;;  %248 = vmatpush.msra.mxu2 %v34_v10 }
  0x17   :  { %182 = vmatpush.msra.mxu1 %v173_v23  ;;  %258 = vmatpush.msra.mxu3 %v173_v23 }
  0x18   :  { %60 = vmatpush.msra.mxu0 %v33_v11  ;;  %249 = vmatpush.msra.mxu2 %v33_v11 }
  0x19   :  { %183 = vmatpush.msra.mxu1 %v172_v25  ;;  %259 = vmatpush.msra.mxu3 %v172_v25 }
  0x1a   :  { %61 = vmatpush.msra.mxu0 %v32_v12  ;;  %250 = vmatpush.msra.mxu2 %v32_v12 }
  0x1b   :  { %184 = vmatpush.msra.mxu1 %v171_v27  ;;  %260 = vmatpush.msra.mxu3 %v171_v27 }
  0x1c   :  { %62 = vmatpush.msra.mxu0 %v31_v13  ;;  %251 = vmatpush.msra.mxu2 %v31_v13 }
  0x1d   :  { %185 = vmatpush.msra.mxu1 %v170_v29  ;;  %261 = vmatpush.msra.mxu3 %v170_v29 }
  0x1e   :  { %63 = vmatpush.msra.mxu0 %v30_v14  ;;  %252 = vmatpush.msra.mxu2 %v30_v14 }
  0x1f   :  { %186 = vmatpush.msra.mxu1 %v169_v30  ;;  %262 = vmatpush.msra.mxu3 %v169_v30 }
  0x20   :  { %64 = vmatpush.msra.mxu0 %v29_v15  ;;  %253 = vmatpush.msra.mxu2 %v29_v15 }
  0x21   :  { %65 = vmatmul.f32.vlgmr.msra.gmra.mxu0 %v27_v16  ;;  %68 = vmatmul.f32.vlgmr.msra.gmra.mxu2 %v28_v17 }
  0x22   :  { %187 = vmatpush.msra.mxu1 %v168_v33  ;;  %263 = vmatpush.msra.mxu3 %v168_v33 }
  0x24   :  { %188 = vmatpush.msra.mxu1 %v167_v36  ;;  %264 = vmatpush.msra.mxu3 %v167_v36 }
  0x26   :  { %189 = vmatpush.msra.mxu1 %v166_v39  ;;  %265 = vmatpush.msra.mxu3 %v166_v39 }
  0x28   :  { %190 = vmatpush.msra.mxu1 %v165_v43  ;;  %266 = vmatpush.msra.mxu3 %v165_v43 }
  0x2a   :  { %191 = vmatpush.msra.mxu1 %v164_v47  ;;  %267 = vmatpush.msra.mxu3 %v164_v47 }
  0x2c   :  { %192 = vmatpush.msra.mxu1 %v163_v52  ;;  %268 = vmatpush.msra.mxu3 %v163_v52 }
  0x2e   :  { %193 = vmatpush.msra.mxu1 %v162_v56  ;;  %269 = vmatpush.msra.mxu3 %v162_v56  ;;  %v274_v56 = vld [vmem:[%s483_s4] ss:$0 sm:$0xff] }
  0x9e   :  { %v66_v24 = vpop.f32.mrf.mxu0 }
  0x9f   :  { %v413_v26 = vadd.f32 %v273_v22, %v66_v24 }
  0xa1   :  { %v419_v28 = vmul.f32 0.70710677, %v413_v26  ;;  %v72_v47 = vmul.f32 0.5, %v413_v26 }
  0xa3   :  { %v76_v31 = vmul.f32 %v419_v28, %v419_v28 }
  0xa4   :  { %v69_v32 = vpop.f32.mrf.mxu2 }
  0xa5   :  { %v432_v34 = vmin.f32 %v76_v31, 16.0  ;;  %v434_v35 = vadd.f32 %v273_v22, %v69_v32 }
  0xa7   :  { %v78_v37 = vmul.f32 2.1237322e-06, %v432_v34  ;;  %v441_v38 = vmul.f32 0.70710677, %v434_v35  ;;  %v89_v40 = vmul.f32 3.8918573e-05, %v432_v34 }
  0xa9   :  { %v79_v41 = vadd.f32 0.00028619796, %v78_v37  ;;  %v116_v42 = vmul.f32 %v441_v38, %v441_v38  ;;  %v90_v44 = vadd.f32 0.001143296, %v89_v40 }
  0xab   :  { %v80_v45 = vmul.f32 %v79_v41, %v432_v34  ;;  %v117_v46 = vmin.f32 %v116_v42, 16.0  ;;  %v91_v48 = vmul.f32 %v90_v44, %v432_v34 }
  0xad   :  { %v118_v49 = vmul.f32 2.1237322e-06, %v117_v46  ;;  %v129_v50 = vmul.f32 3.8918573e-05, %v117_v46  ;;  %v81_v51 = vadd.f32 0.0036580483, %v80_v45 }
  0xae   :  { %v92_v53 = vadd.f32 0.014752088, %v91_v48 }
  0xaf   :  { %v119_v54 = vadd.f32 0.00028619796, %v118_v49  ;;  %v130_v55 = vadd.f32 0.001143296, %v129_v50  ;;  %v82_v60 = vmul.f32 %v81_v51, %v432_v34 }
  0xb0   :  { %v93_v57 = vmul.f32 %v92_v53, %v432_v34  ;;  %v73_v53 = vmul.f32 0.5, %v434_v35 }
  0xb1   :  { %v120_v58 = vmul.f32 %v119_v54, %v117_v46  ;;  %v131_v59 = vmul.f32 %v130_v55, %v117_v46  ;;  %v83_v2 = vadd.f32 0.05243302, %v82_v60 }
  0xb2   :  { %v94_v61 = vadd.f32 0.112945676, %v93_v57 }
  0xb3   :  { %v121_v62 = vadd.f32 0.0036580483, %v120_v58  ;;  %v132_v63 = vadd.f32 0.014752088, %v131_v59  ;;  %v84_v8 = vmul.f32 %v83_v2, %v432_v34 }
  0xb4   :  { %v95_v0 = vmul.f32 %v94_v61, %v432_v34 }
  0xb5   :  { %v133_v1 = vmul.f32 %v132_v63, %v117_v46  ;;  %v122_v4 = vmul.f32 %v121_v62, %v117_v46  ;;  %v85_v13 = vadd.f32 0.18741608, %v84_v8 }
  0xb6   :  { %v96_v3 = vadd.f32 0.4994258, %v95_v0 }
  0xb7   :  { %v134_v5 = vadd.f32 0.112945676, %v133_v1  ;;  %v123_v10 = vadd.f32 0.05243302, %v122_v4  ;;  %v86_v17 = vmul.f32 %v85_v13, %v432_v34 }
  0xb8   :  { %v97_v6 = vmul.f32 %v96_v3, %v432_v34 }
  0xb9   :  { %v135_v7 = vmul.f32 %v134_v5, %v117_v46  ;;  %v124_v14 = vmul.f32 %v123_v10, %v117_v46  ;;  %v87_v21 = vadd.f32 1.1283791, %v86_v17 }
  0xba   :  { %v98_v9 = vadd.f32 1.0, %v97_v6 }
  0xbb   :  { %v136_v11 = vadd.f32 0.4994258, %v135_v7  ;;  %v125_v18 = vadd.f32 0.18741608, %v124_v14  ;;  %v88_v31 = vmul.f32 %v87_v21, %v419_v28 }
  0xbc   :  { %275 = vrcp.f32 %v98_v9  ;;  %v110_v22 = vand.u32 2147483648, %v98_v9  ;;  %v108_v27 = vand.u32 2147483647, %v98_v9  ;;  %vm104_vm1 = vweird.f32 %v98_v9 }
  0xbd   :  { %v137_v12 = vmul.f32 %v136_v11, %v117_v46  ;;  %v126_v24 = vmul.f32 %v125_v18, %v117_v46 }
  0xbe   :  { %v111_v32 = vor.u32 1.1754944e-38, %v110_v22  ;;  %vm109_vm3 = vcmp.eq.f32.partialorder %v108_v27, 8.507059e+37 }
  0xbf   :  { %v138_v15 = vadd.f32 1.0, %v137_v12  ;;  %v127_v36 = vadd.f32 1.1283791, %v126_v24 }
  0xc1   :  { %277 = vrcp.f32 %v138_v15  ;;  %v150_v37 = vand.u32 2147483648, %v138_v15  ;;  %v148_v41 = vand.u32 2147483647, %v138_v15  ;;  %vm144_vm5 = vweird.f32 %v138_v15 }
  0xc2   :  { %v276_v16 = vpop.eup %275  ;;  %v128_v46 = vmul.f32 %v127_v36, %v441_v38 }
  0xc3   :  { %v100_v19 = vmul.f32 %v276_v16, %v98_v9  ;;  %vm105_vm0 = vweird.f32 %v276_v16  ;;  %v151_v45 = vor.u32 1.1754944e-38, %v150_v37  ;;  %vm149_vm7 = vcmp.eq.f32.partialorder %v148_v41, 8.507059e+37 }
  0xc4   :  { %vm106_vm2 = vmor %vm104_vm1, %vm105_vm0 }
  0xc5   :  { %v101_v20 = vsub.f32 1.0, %v100_v19 }
  0xc7   :  { %v278_v23 = vpop.eup %277  ;;  %v102_v25 = vmul.f32 %v276_v16, %v101_v20 }
  0xc8   :  { %v140_v29 = vmul.f32 %v278_v23, %v138_v15  ;;  %vm145_vm4 = vweird.f32 %v278_v23 }
  0xc9   :  { %v103_v30 = vadd.f32 %v276_v16, %v102_v25  ;;  %vm146_vm6 = vmor %vm144_vm5, %vm145_vm4 }
  0xca   :  { %v141_v33 = vsub.f32 1.0, %v140_v29 }
  0xcb   :  { %v107_v34 = vsel %vm106_vm2, %v276_v16, %v103_v30 }
  0xcc   :  { %v112_v39 = vsel %vm109_vm3, %v111_v32, %v107_v34  ;;  %v142_v40 = vmul.f32 %v278_v23, %v141_v33 }
  0xcd   :  { %v113_v42 = vmul.f32 %v112_v39, %v88_v31 }
  0xce   :  { %v143_v43 = vadd.f32 %v278_v23, %v142_v40 }
  0xcf   :  { %v236_v44 = vclamps-f32 %v113_v42, 1.0 }
  0xd0   :  { %v147_v28 = vsel %vm146_vm6, %v278_v23, %v143_v43 }
  0xd1   :  { %v156_v48 = vadd.f32 1.0, %v236_v44  ;;  %v152_v49 = vsel %vm149_vm7, %v151_v45, %v147_v28 }
  0xd2   :  { %v153_v50 = vmul.f32 %v152_v49, %v128_v46 }
  0xd3   :  { %v158_v51 = vmul.f32 %v156_v48, %v72_v47 }
  0xd4   :  { %v237_v52 = vclamps-f32 %v153_v50, 1.0 }
  0xd5   :  { %194 = vmatmul.f32.vlgmr.msra.gmra.mxu1 %v158_v51 }
  0xd6   :  { %v157_v54 = vadd.f32 1.0, %v237_v52 }
  0xd8   :  { %v159_v55 = vmul.f32 %v157_v54, %v73_v53 }
  0xda   :  { %197 = vmatmul.f32.vlgmr.msra.gmra.mxu3 %v159_v55 }
 0x152   :  { %v195_v38 = vpop.f32.mrf.mxu1 }
 0x153   :  { %v214_v57 = vadd.f32 %v274_v56, %v195_v38 }
 0x155   :  { %216 = vst [vmem:[#allocation3] sm:$0xff] %v214_v57 }
 0x15d   :  { %v198_v26 = vpop.f32.mrf.mxu3 }
 0x15e   :  { %v215_v35 = vadd.f32 %v274_v56, %v198_v26 }
 0x160   :  { %217 = vst [vmem:[#allocation3 + $0x8] sm:$0xff] %v215_v35 }
 0x161   :  { %230 = dma.vmem_to_hbm [thread:$0]  %s223_s10, 256, %s225_s13, [#allocation4], %s306_s14, %s306_s14, %s307_s15  }
 0x162   :  { %303 = dma.done.wait [#allocation4], 256  }
 0x163   :  { %304 = vsyncadd [#allocation4], 4294967040 }
 0x164   :  { %235 = vsyncpa [#allocation4], 1 }

</bundles_post_ra>
